<compile_context>
chip_gen: v7x
topology: tpu7x:2x2x1
jax: 0.10.0
libtpu: 0.0.40
codegen_flags: <defaults>
</compile_context>

<pallas_src>
import functools

import jax
import jax.numpy as jnp
from jax.experimental import pallas as pl
from jax.experimental.pallas import tpu as pltpu

IN_DIM = 84
OUT_DIM = 7
HIDDEN_PAD = 128        # lane-dense hidden width
OUT_PAD = 128           # lane-dense output width (sliced back to 7 in wrapper)
MAX_BATCH_TILE = 4096   # ~1.4 MiB bf16 x-tile; VMEM use stays far below limits
SPLIT_THRESHOLD = 256   # rows; above this, force >=2 grid steps (v7x megacore)


def dqn_kernel(x_ref, w1_ref, w2_ref, w3_ref, w4_ref, b_ref, o_ref):
    # b_ref: (8, 128) f32; rows 0..3 hold (zero-padded) b1..b4.
    b1 = b_ref[0:1, :]
    b2 = b_ref[1:2, :]
    b3 = b_ref[2:3, :]
    b4 = b_ref[3:4, :]

    # Layer 1: Linear(84 -> 128pad) + ReLU   (bf16 MXU, f32 accumulate)
    h = jnp.dot(x_ref[...], w1_ref[...], preferred_element_type=jnp.float32)
    h = jnp.maximum(h + b1, 0.0)
    # Layer 2: Linear(128pad -> 128pad) + ReLU
    h = jnp.dot(h.astype(jnp.bfloat16), w2_ref[...],
                preferred_element_type=jnp.float32)
    h = jnp.maximum(h + b2, 0.0)
    # Layer 3: Linear(128pad -> 128pad) + ReLU
    h = jnp.dot(h.astype(jnp.bfloat16), w3_ref[...],
                preferred_element_type=jnp.float32)
    h = jnp.maximum(h + b3, 0.0)
    # Layer 4: Linear(128pad -> 128pad), no activation; lane-dense bf16 store.
    h = jnp.dot(h.astype(jnp.bfloat16), w4_ref[...],
                preferred_element_type=jnp.float32)
    o_ref[...] = (h + b4).astype(o_ref.dtype)


def _cdiv(a, m):
    return (a + m - 1) // m


def _round_up(n, m):
    return ((n + m - 1) // m) * m


def _pad2d(a, rows, cols):
    r, c = a.shape
    return jnp.pad(a, ((0, rows - r), (0, cols - c)))


def _dqn_forward(x_nchw, params):
    """x_nchw: [B, C, H, W] float32 with C*H*W == 84. Returns [B, 7] float32."""
    B = x_nchw.shape[0]
    x_flat = x_nchw.reshape(B, -1).astype(jnp.float32)   # Flatten (glue)
    assert x_flat.shape[1] == IN_DIM

    (w1, b1), (w2, b2), (w3, b3), (w4, b4) = params

    # Lane-dense bf16 weights: pad hidden/out dims up to 128 with zeros.
    w1p = _pad2d(w1, IN_DIM, HIDDEN_PAD).astype(jnp.bfloat16)
    w2p = _pad2d(w2, HIDDEN_PAD, HIDDEN_PAD).astype(jnp.bfloat16)
    w3p = _pad2d(w3, HIDDEN_PAD, HIDDEN_PAD).astype(jnp.bfloat16)
    w4p = _pad2d(w4, HIDDEN_PAD, OUT_PAD).astype(jnp.bfloat16)

    # Pack the four biases into one (8, 128) f32 operand (pad columns = 0).
    bias_pack = jnp.zeros((8, HIDDEN_PAD), jnp.float32)
    bias_pack = bias_pack.at[0, : b1.shape[0]].set(b1.astype(jnp.float32))
    bias_pack = bias_pack.at[1, : b2.shape[0]].set(b2.astype(jnp.float32))
    bias_pack = bias_pack.at[2, : b3.shape[0]].set(b3.astype(jnp.float32))
    bias_pack = bias_pack.at[3, : b4.shape[0]].set(b4.astype(jnp.float32))

    # Padding-aware batch tiling.  Round rows to 16 (bf16 sublane packing),
    # choose the number of grid steps to (a) respect MAX_BATCH_TILE and
    # (b) give >=2 steps for medium/large batches so v7x's two TensorCores
    # both get work, then pick the smallest 16-aligned tile covering B.
    b16 = _round_up(B, 16)
    n_steps = max(_cdiv(b16, MAX_BATCH_TILE), 2 if b16 >= SPLIT_THRESHOLD else 1)
    bt = _round_up(_cdiv(b16, n_steps), 16)
    b_pad = n_steps * bt
    x_pad = jnp.pad(x_flat, ((0, b_pad - B), (0, 0))).astype(jnp.bfloat16)
    grid = (n_steps,)

    flops = 2 * b_pad * (IN_DIM * HIDDEN_PAD
                         + 2 * HIDDEN_PAD * HIDDEN_PAD
                         + HIDDEN_PAD * OUT_PAD)
    weight_bytes = sum(int(w.size) * 2 for w in (w1p, w2p, w3p, w4p)) \
        + int(bias_pack.size) * 4
    bytes_accessed = b_pad * IN_DIM * 2 + b_pad * OUT_PAD * 2 + weight_bytes

    const = lambda i: (0, 0)
    out = pl.pallas_call(
        dqn_kernel,
        out_shape=jax.ShapeDtypeStruct((b_pad, OUT_PAD), jnp.bfloat16),
        grid=grid,
        in_specs=[
            pl.BlockSpec((bt, IN_DIM), lambda i: (i, 0)),          # x tile
            pl.BlockSpec((IN_DIM, HIDDEN_PAD), const),             # w1
            pl.BlockSpec((HIDDEN_PAD, HIDDEN_PAD), const),         # w2
            pl.BlockSpec((HIDDEN_PAD, HIDDEN_PAD), const),         # w3
            pl.BlockSpec((HIDDEN_PAD, OUT_PAD), const),            # w4
            pl.BlockSpec((8, HIDDEN_PAD), const),                  # packed biases
        ],
        out_specs=pl.BlockSpec((bt, OUT_PAD), lambda i: (i, 0)),
        compiler_params=pltpu.CompilerParams(
            dimension_semantics=("parallel",)),
        cost_estimate=pl.CostEstimate(
            flops=flops, transcendentals=0, bytes_accessed=bytes_accessed),
    )(x_pad, w1p, w2p, w3p, w4p, bias_pack)

    # Slice off pad rows / pad output columns; return f32 like the torch module.
    return out[:B, :OUT_DIM].astype(jnp.float32)


# jit the wrapper so flatten + pad + bf16 cast of x fuse into one producing
# fusion (no extra HBM round trips), and weight padding is done once per shape.
dqn_forward = jax.jit(_dqn_forward)


def init_params(key):
    """Deterministic synthetic params; each weight stored as (in, out) = torch W.T."""
    sizes = [(84, 64), (64, 32), (32, 16), (16, 7)]
    params = []
    for fan_in, fan_out in sizes:
        key, kw, kb = jax.random.split(key, 3)
        bound = 1.0 / jnp.sqrt(fan_in)  # torch default uniform bound
        w = jax.random.uniform(kw, (fan_in, fan_out), jnp.float32, -bound, bound)
        b = jax.random.uniform(kb, (fan_out,), jnp.float32, -bound, bound)
        params.append((w, b))
    return params


def dqn_reference_f32(x_nchw, params):
    """Pure-JAX full-precision reference."""
    h = x_nchw.reshape(x_nchw.shape[0], -1)
    for i, (w, b) in enumerate(params):
        h = h @ w + b
        if i < len(params) - 1:
            h = jnp.maximum(h, 0.0)
    return h


def dqn_reference_bf16(x_nchw, params):
    """Reference mimicking the kernel: bf16 inputs/weights, f32 accumulation,
    bf16 output store."""
    h = x_nchw.reshape(x_nchw.shape[0], -1).astype(jnp.bfloat16)
    for i, (w, b) in enumerate(params):
        h = jnp.dot(h, w.astype(jnp.bfloat16),
                    preferred_element_type=jnp.float32) + b
        if i < len(params) - 1:
            h = jnp.maximum(h, 0.0).astype(jnp.bfloat16)
    return h.astype(jnp.bfloat16).astype(jnp.float32)


if __name__ == "__main__":
    key = jax.random.PRNGKey(0)
    key, kx = jax.random.split(key)
    params = init_params(key)

    # batch=2 (tiny, single 16-row tile) and batch=700 (ragged: two 352-row
    # tiles, exercises the padding-aware 2-step parallel grid).
    for batch in (2, 700):
        kx, kb = jax.random.split(kx)
        x = jax.random.normal(kb, (batch, 2, 6, 7), jnp.float32)

        out = jax.block_until_ready(dqn_forward(x, params))
        assert out.shape == (batch, 7)
        assert out.dtype == jnp.float32

        ref16 = dqn_reference_bf16(x, params)
        ref32 = dqn_reference_f32(x, params)
        # ref16 differs only by MXU vs XLA accumulation order + final bf16 ulp.
        assert jnp.allclose(out, ref16, atol=2e-2, rtol=2e-2)
        # ref32 additionally carries the bf16 input/weight quantization.
        assert jnp.allclose(out, ref32, atol=5e-2, rtol=5e-2)

    print("KERNEL_OK")
</pallas_src>

<mosaic_0001>
module attributes {stable_mosaic.version = 11 : i64} {
  func.func @dqn_kernel(%arg0: i32, %arg1: memref<16x84xbf16, #tpu.memory_space<vmem>>, %arg2: memref<84x128xbf16, #tpu.memory_space<vmem>>, %arg3: memref<128x128xbf16, #tpu.memory_space<vmem>>, %arg4: memref<128x128xbf16, #tpu.memory_space<vmem>>, %arg5: memref<128x128xbf16, #tpu.memory_space<vmem>>, %arg6: memref<8x128xf32, #tpu.memory_space<vmem>>, %arg7: memref<16x128xbf16, #tpu.memory_space<vmem>>) attributes {dimension_semantics = [#tpu.dimension_semantics<parallel>], iteration_bounds = array<i64: 1>, scalar_prefetch = 0 : i64, scratch_operands = 0 : i64, tpu.core_type = #tpu.core_type<tc>, window_params = [{transform_indices = @transform_0, window_bounds = array<i64: 16, 84>}, {pipeline_mode = #tpu.pipeline_mode<synchronous>, transform_indices = @transform_1, window_bounds = array<i64: 84, 128>}, {pipeline_mode = #tpu.pipeline_mode<synchronous>, transform_indices = @transform_2, window_bounds = array<i64: 128, 128>}, {pipeline_mode = #tpu.pipeline_mode<synchronous>, transform_indices = @transform_3, window_bounds = array<i64: 128, 128>}, {pipeline_mode = #tpu.pipeline_mode<synchronous>, transform_indices = @transform_4, window_bounds = array<i64: 128, 128>}, {pipeline_mode = #tpu.pipeline_mode<synchronous>, transform_indices = @transform_5, window_bounds = array<i64: 8, 128>}, {transform_indices = @transform_6, window_bounds = array<i64: 16, 128>}]} {
    %c0 = arith.constant 0 : index
    %c0_0 = arith.constant 0 : index
    %0 = vector.load %arg6[%c0, %c0_0] : memref<8x128xf32, #tpu.memory_space<vmem>>, vector<1x128xf32>
    %c1 = arith.constant 1 : index
    %c0_1 = arith.constant 0 : index
    %1 = vector.load %arg6[%c1, %c0_1] : memref<8x128xf32, #tpu.memory_space<vmem>>, vector<1x128xf32>
    %c2 = arith.constant 2 : index
    %c0_2 = arith.constant 0 : index
    %2 = vector.load %arg6[%c2, %c0_2] : memref<8x128xf32, #tpu.memory_space<vmem>>, vector<1x128xf32>
    %c3 = arith.constant 3 : index
    %c0_3 = arith.constant 0 : index
    %3 = vector.load %arg6[%c3, %c0_3] : memref<8x128xf32, #tpu.memory_space<vmem>>, vector<1x128xf32>
    %c0_4 = arith.constant 0 : index
    %c0_5 = arith.constant 0 : index
    %4 = vector.load %arg1[%c0_4, %c0_5] : memref<16x84xbf16, #tpu.memory_space<vmem>>, vector<16x84xbf16>
    %c0_6 = arith.constant 0 : index
    %c0_7 = arith.constant 0 : index
    %5 = vector.load %arg2[%c0_6, %c0_7] : memref<84x128xbf16, #tpu.memory_space<vmem>>, vector<84x128xbf16>
    %cst = arith.constant dense<0.000000e+00> : vector<16x128xf32>
    %6 = tpu.matmul %4, %5, %cst {dimension_numbers = #tpu.dot_dimension_numbers<[1], [0], [0], [1], [0, 0, 1, 1], [], []>} : vector<16x84xbf16>, vector<84x128xbf16>, vector<16x128xf32> -> vector<16x128xf32>
    %7 = vector.broadcast %0 : vector<1x128xf32> to vector<16x128xf32>
    %8 = arith.addf %6, %7 : vector<16x128xf32>
    %cst_8 = arith.constant 0.000000e+00 : f32
    %9 = vector.broadcast %cst_8 : f32 to vector<16x128xf32>
    %10 = arith.maximumf %8, %9 : vector<16x128xf32>
    %11 = arith.truncf %10 : vector<16x128xf32> to vector<16x128xbf16>
    %c0_9 = arith.constant 0 : index
    %c0_10 = arith.constant 0 : index
    %12 = vector.load %arg3[%c0_9, %c0_10] : memref<128x128xbf16, #tpu.memory_space<vmem>>, vector<128x128xbf16>
    %cst_11 = arith.constant dense<0.000000e+00> : vector<16x128xf32>
    %13 = tpu.matmul %11, %12, %cst_11 {dimension_numbers = #tpu.dot_dimension_numbers<[1], [0], [0], [1], [0, 0, 1, 1], [], []>} : vector<16x128xbf16>, vector<128x128xbf16>, vector<16x128xf32> -> vector<16x128xf32>
    %14 = vector.broadcast %1 : vector<1x128xf32> to vector<16x128xf32>
    %15 = arith.addf %13, %14 : vector<16x128xf32>
    %cst_12 = arith.constant 0.000000e+00 : f32
    %16 = vector.broadcast %cst_12 : f32 to vector<16x128xf32>
    %17 = arith.maximumf %15, %16 : vector<16x128xf32>
    %18 = arith.truncf %17 : vector<16x128xf32> to vector<16x128xbf16>
    %c0_13 = arith.constant 0 : index
    %c0_14 = arith.constant 0 : index
    %19 = vector.load %arg4[%c0_13, %c0_14] : memref<128x128xbf16, #tpu.memory_space<vmem>>, vector<128x128xbf16>
    %cst_15 = arith.constant dense<0.000000e+00> : vector<16x128xf32>
    %20 = tpu.matmul %18, %19, %cst_15 {dimension_numbers = #tpu.dot_dimension_numbers<[1], [0], [0], [1], [0, 0, 1, 1], [], []>} : vector<16x128xbf16>, vector<128x128xbf16>, vector<16x128xf32> -> vector<16x128xf32>
    %21 = vector.broadcast %2 : vector<1x128xf32> to vector<16x128xf32>
    %22 = arith.addf %20, %21 : vector<16x128xf32>
    %cst_16 = arith.constant 0.000000e+00 : f32
    %23 = vector.broadcast %cst_16 : f32 to vector<16x128xf32>
    %24 = arith.maximumf %22, %23 : vector<16x128xf32>
    %25 = arith.truncf %24 : vector<16x128xf32> to vector<16x128xbf16>
    %c0_17 = arith.constant 0 : index
    %c0_18 = arith.constant 0 : index
    %26 = vector.load %arg5[%c0_17, %c0_18] : memref<128x128xbf16, #tpu.memory_space<vmem>>, vector<128x128xbf16>
    %cst_19 = arith.constant dense<0.000000e+00> : vector<16x128xf32>
    %27 = tpu.matmul %25, %26, %cst_19 {dimension_numbers = #tpu.dot_dimension_numbers<[1], [0], [0], [1], [0, 0, 1, 1], [], []>} : vector<16x128xbf16>, vector<128x128xbf16>, vector<16x128xf32> -> vector<16x128xf32>
    %28 = vector.broadcast %3 : vector<1x128xf32> to vector<16x128xf32>
    %29 = arith.addf %27, %28 : vector<16x128xf32>
    %30 = arith.truncf %29 : vector<16x128xf32> to vector<16x128xbf16>
    %c0_20 = arith.constant 0 : index
    %c0_21 = arith.constant 0 : index
    %31 = vector.load %arg7[%c0_20, %c0_21] : memref<16x128xbf16, #tpu.memory_space<vmem>>, vector<16x128xbf16>
    tpu.vector_store %arg7[%c0_20, %c0_21], %30 {strides = array<i32>} : memref<16x128xbf16, #tpu.memory_space<vmem>>, vector<16x128xbf16>,
    return
  }
  func.func @transform_0(%arg0: i32) -> (i32, i32) {
    %c0_i32 = arith.constant 0 : i32
    %c0_i32_0 = arith.constant 0 : i32
    return %arg0, %c0_i32 : i32, i32
  }
  func.func @transform_1(%arg0: i32) -> (i32, i32) {
    %c0_i32 = arith.constant 0 : i32
    %c0_i32_0 = arith.constant 0 : i32
    %c0_i32_1 = arith.constant 0 : i32
    return %c0_i32, %c0_i32_0 : i32, i32
  }
  func.func @transform_2(%arg0: i32) -> (i32, i32) {
    %c0_i32 = arith.constant 0 : i32
    %c0_i32_0 = arith.constant 0 : i32
    %c0_i32_1 = arith.constant 0 : i32
    return %c0_i32, %c0_i32_0 : i32, i32
  }
  func.func @transform_3(%arg0: i32) -> (i32, i32) {
    %c0_i32 = arith.constant 0 : i32
    %c0_i32_0 = arith.constant 0 : i32
    %c0_i32_1 = arith.constant 0 : i32
    return %c0_i32, %c0_i32_0 : i32, i32
  }
  func.func @transform_4(%arg0: i32) -> (i32, i32) {
    %c0_i32 = arith.constant 0 : i32
    %c0_i32_0 = arith.constant 0 : i32
    %c0_i32_1 = arith.constant 0 : i32
    return %c0_i32, %c0_i32_0 : i32, i32
  }
  func.func @transform_5(%arg0: i32) -> (i32, i32) {
    %c0_i32 = arith.constant 0 : i32
    %c0_i32_0 = arith.constant 0 : i32
    %c0_i32_1 = arith.constant 0 : i32
    return %c0_i32, %c0_i32_0 : i32, i32
  }
  func.func @transform_6(%arg0: i32) -> (i32, i32) {
    %c0_i32 = arith.constant 0 : i32
    %c0_i32_0 = arith.constant 0 : i32
    return %arg0, %c0_i32 : i32, i32
  }
}

</mosaic_0001>

<bundles_post_ra>
// kernel: _dqn_forward.1
= control target key start
LH: loop header
LB: loop body
LE: loop exit
PB: predicated region body
PF: predicated region fallthrough
CT: control target
= control target key end

     0   :  { %v670_v0 = vmov 0.0   ;;  %vm671_vm0 = vmmov 0   ;;  %vm87_vm1 = vcmask 1041408   ;;  %vm83_vm2 = vcmask 687104   ;;  %s853_s1 = inlined_call_operand.vmem [shape: bf16[84,128], index: 1, kind: input, shape index: {}]   ;;  %s854_s2 = inlined_call_operand.vmem [shape: bf16[128,128], index: 2, kind: input, shape index: {}]   ;;  %s855_s0 = inlined_call_operand.vmem [shape: bf16[16,84], index: 0, kind: input, shape index: {}]   ;;  %s856_s3 = inlined_call_operand.vmem [shape: bf16[128,128], index: 3, kind: input, shape index: {}]   ;;  %s857_s5 = inlined_call_operand.vmem [shape: f32[8,128], index: 5, kind: input, shape index: {}]   ;;  %s858_s4 = inlined_call_operand.vmem [shape: bf16[128,128], index: 4, kind: input, shape index: {}]   ;;  %s859_s6 = inlined_call_operand.vmem [shape: bf16[16,128], index: 6, kind: output, shape index: {}]  }
   0x1   :  { %561 = vmatprep.subr.bf16.mxu0 %v670_v0  ;;  %v639_v1 = vld [vmem:[%s853_s1] sm:$0xff]   ;;  %573 = vmatprep.mubr.msk.bf16.mxu0 %vm671_vm0, %v670_v0  ;;  %v640_v2 = vld [vmem:[%s853_s1 + $0x8] sm:$0xff]   ;;  %v641_v3 = vld [vmem:[%s853_s1 + $0x10] sm:$0xff]  }
   0x2   :  { %577 = vmatprep.subr.bf16.mxu1 %v670_v0  ;;  %593 = vmatprep.mubr.msk.bf16.mxu1 %vm671_vm0, %v670_v0  ;;  %v646_v4 = vld [vmem:[%s854_s2] sm:$0xff]   ;;  %v647_v5 = vld [vmem:[%s854_s2 + $0x8] sm:$0xff]   ;;  %v642_v6 = vld [vmem:[%s853_s1 + $0x18] sm:$0xff]  }
   0x3   :  { %562 = vmatpush3.bf16.msra.mxu0 %v639_v1  ;;  %578 = vmatpush3.bf16.msra.mxu1 %v646_v4  ;;  %v648_v7 = vld [vmem:[%s854_s2 + $0x10] sm:$0xff]   ;;  %v643_v8 = vld [vmem:[%s853_s1 + $0x20] sm:$0xff]   ;;  %v644_v9 = vld [vmem:[%s853_s1 + $0x28] ss:$0 sps:$4 sm:$0x33]  }
   0x4   :  { %563 = vmatprep.subr.bf16.mxu0 %v670_v0  ;;  %579 = vmatprep.subr.bf16.mxu1 %v670_v0  ;;  %v649_v10 = vld [vmem:[%s854_s2 + $0x18] sm:$0xff]   ;;  %v89_v11 = vsel %vm87_vm1, %v644_v9, 0  ;;  %v645_v12 = vld [vmem:[%s855_s0] sm:$0xff]   ;;  %v651_v14 = vld [vmem:[%s854_s2 + $0x28] sm:$0xff]  }
   0x5   :  { %v650_v13 = vld [vmem:[%s854_s2 + $0x20] sm:$0xff]   ;;  %v652_v15 = vld [vmem:[%s854_s2 + $0x30] sm:$0xff]   ;;  %v653_v16 = vld [vmem:[%s854_s2 + $0x38] sm:$0xff]  }
   0x6   :  { %v654_v17 = vld [vmem:[%s856_s3] sm:$0xff]   ;;  %v655_v18 = vld [vmem:[%s856_s3 + $0x8] sm:$0xff]   ;;  %v656_v19 = vld [vmem:[%s856_s3 + $0x10] sm:$0xff]  }
   0x7   :  { %564 = vmatpush3.bf16.msra.mxu0 %v640_v2  ;;  %580 = vmatpush3.bf16.msra.mxu1 %v647_v5  ;;  %v657_v20 = vld [vmem:[%s856_s3 + $0x18] sm:$0xff]   ;;  %v658_v21 = vld [vmem:[%s856_s3 + $0x20] sm:$0xff]   ;;  %v659_v22 = vld [vmem:[%s856_s3 + $0x28] sm:$0xff]  }
   0x8   :  { %565 = vmatprep.subr.bf16.mxu0 %v670_v0  ;;  %581 = vmatprep.subr.bf16.mxu1 %v670_v0  ;;  %v482_v23 = vld [vmem:[%s857_s5] ss:$0 sm:$0xff]  ;;  %v660_v33 = vld [vmem:[%s856_s3 + $0x30] sm:$0xff]   ;;  %v661_v34 = vld [vmem:[%s856_s3 + $0x38] sm:$0xff]  }
   0x9   :  { %v662_v35 = vld [vmem:[%s858_s4] sm:$0xff]   ;;  %v663_v36 = vld [vmem:[%s858_s4 + $0x8] sm:$0xff]   ;;  %v664_v37 = vld [vmem:[%s858_s4 + $0x10] sm:$0xff]  }
   0xa   :  { %v665_v38 = vld [vmem:[%s858_s4 + $0x18] sm:$0xff]   ;;  %v666_v39 = vld [vmem:[%s858_s4 + $0x20] sm:$0xff]   ;;  %v667_v40 = vld [vmem:[%s858_s4 + $0x28] sm:$0xff]  }
   0xb   :  { %566 = vmatpush3.bf16.msra.mxu0 %v641_v3  ;;  %582 = vmatpush3.bf16.msra.mxu1 %v648_v7  ;;  %v491_v41 = vld [vmem:[%s857_s5 + $0x1] ss:$0 sm:$0xff]  ;;  %v668_v51 = vld [vmem:[%s858_s4 + $0x30] sm:$0xff]   ;;  %v669_v52 = vld [vmem:[%s858_s4 + $0x38] sm:$0xff]  }
   0xc   :  { %567 = vmatprep.subr.bf16.mxu0 %v670_v0  ;;  %583 = vmatprep.subr.bf16.mxu1 %v670_v0  ;;  %v500_v53 = vld [vmem:[%s857_s5 + $0x2] ss:$0 sm:$0xff]  ;;  %v509_v63 = vld [vmem:[%s857_s5 + $0x3] ss:$0 sm:$0xff] }
   0xf   :  { %568 = vmatpush3.bf16.msra.mxu0 %v642_v6  ;;  %584 = vmatpush3.bf16.msra.mxu1 %v649_v10 }
  0x10   :  { %569 = vmatprep.subr.bf16.mxu0 %v670_v0  ;;  %585 = vmatprep.subr.bf16.mxu1 %v670_v0 }
  0x13   :  { %570 = vmatpush3.bf16.msra.mxu0 %v643_v8  ;;  %586 = vmatpush3.bf16.msra.mxu1 %v650_v13 }
  0x14   :  { %571 = vmatprep.subr.bf16.mxu0 %v670_v0  ;;  %587 = vmatprep.subr.bf16.mxu1 %v670_v0 }
  0x17   :  { %572 = vmatpush3.bf16.msra.mxu0 %v89_v11  ;;  %588 = vmatpush3.bf16.msra.mxu1 %v651_v14 }
  0x18   :  { %597 = vmatprep.subr.bf16.mxu0 %v670_v0  ;;  %589 = vmatprep.subr.bf16.mxu1 %v670_v0 }
  0x1a   :  { %574 = vmatmul.mubr.msk.bf16.vlgmr.msra.gmra.mrb[0].mxu0 %vm83_vm2, %v645_v12 }
  0x1b   :  { %613 = vmatprep.mubr.msk.bf16.mxu0 %vm671_vm0, %v670_v0  ;;  %590 = vmatpush3.bf16.msra.mxu1 %v652_v15 }
  0x1c   :  { %591 = vmatprep.subr.bf16.mxu1 %v670_v0  ;;  %598 = vmatpush3.bf16.msra.mxu0 %v654_v17 }
  0x1d   :  { %599 = vmatprep.subr.bf16.mxu0 %v670_v0 }
  0x1f   :  { %592 = vmatpush3.bf16.msra.mxu1 %v653_v16 }
  0x20   :  { %617 = vmatprep.subr.bf16.mxu1 %v670_v0  ;;  %600 = vmatpush3.bf16.msra.mxu0 %v655_v18 }
  0x21   :  { %601 = vmatprep.subr.bf16.mxu0 %v670_v0 }
  0x24   :  { %602 = vmatpush3.bf16.msra.mxu0 %v656_v19 }
  0x25   :  { %603 = vmatprep.subr.bf16.mxu0 %v670_v0 }
  0x28   :  { %604 = vmatpush3.bf16.msra.mxu0 %v657_v20 }
  0x29   :  { %605 = vmatprep.subr.bf16.mxu0 %v670_v0 }
  0x2c   :  { %606 = vmatpush3.bf16.msra.mxu0 %v658_v21 }
  0x2d   :  { %607 = vmatprep.subr.bf16.mxu0 %v670_v0 }
  0x30   :  { %608 = vmatpush3.bf16.msra.mxu0 %v659_v22 }
  0x31   :  { %609 = vmatprep.subr.bf16.mxu0 %v670_v0 }
  0x34   :  { %610 = vmatpush3.bf16.msra.mxu0 %v660_v33 }
  0x35   :  { %611 = vmatprep.subr.bf16.mxu0 %v670_v0 }
  0x38   :  { %612 = vmatpush3.bf16.msra.mxu0 %v661_v34 }
  0xed   :  { %v125_v24 = vpop.f32.mrb[0].mxu0 }
  0xee   :  { %v126_v25 = vadd.f32 %v482_v23, %v125_v24  ;;  %v575_v26 = vpop.f32.mrb[1].mxu0 }
  0xef   :  { %v128_v27 = vpop.f32.mrb[2].mxu0 }
  0xf0   :  { %v129_v28 = vadd.f32 %v482_v23, %v128_v27  ;;  %v576_v29 = vpop.f32.mrb[3].mxu0  ;;  %v132_v30 = vmax.f32 %v126_v25, 0.0 }
  0xf2   :  { %v133_v31 = vmax.f32 %v129_v28, 0.0 }
  0xf4   :  { %v134_v32 = vpack.c.bf16 %v133_v31, %v132_v30 }
  0xf6   :  { %594 = vmatmul.mubr.bf16.vlgmr.msra.gmra.mrb[0].mxu1 %v134_v32 }
  0xf7   :  { %633 = vmatprep.mubr.msk.bf16.mxu1 %vm671_vm0, %v670_v0  ;;  %618 = vmatpush3.bf16.msra.mxu1 %v662_v35 }
  0xf8   :  { %619 = vmatprep.subr.bf16.mxu1 %v670_v0 }
  0xfb   :  { %620 = vmatpush3.bf16.msra.mxu1 %v663_v36 }
  0xfc   :  { %621 = vmatprep.subr.bf16.mxu1 %v670_v0 }
  0xff   :  { %622 = vmatpush3.bf16.msra.mxu1 %v664_v37 }
 0x100   :  { %623 = vmatprep.subr.bf16.mxu1 %v670_v0 }
 0x103   :  { %624 = vmatpush3.bf16.msra.mxu1 %v665_v38 }
 0x104   :  { %625 = vmatprep.subr.bf16.mxu1 %v670_v0 }
 0x107   :  { %626 = vmatpush3.bf16.msra.mxu1 %v666_v39 }
 0x108   :  { %627 = vmatprep.subr.bf16.mxu1 %v670_v0 }
 0x10b   :  { %628 = vmatpush3.bf16.msra.mxu1 %v667_v40 }
 0x10c   :  { %629 = vmatprep.subr.bf16.mxu1 %v670_v0 }
 0x10f   :  { %630 = vmatpush3.bf16.msra.mxu1 %v668_v51 }
 0x110   :  { %631 = vmatprep.subr.bf16.mxu1 %v670_v0 }
 0x113   :  { %632 = vmatpush3.bf16.msra.mxu1 %v669_v52 }
 0x1c9   :  { %v237_v42 = vpop.f32.mrb[0].mxu1 }
 0x1ca   :  { %v238_v43 = vadd.f32 %v491_v41, %v237_v42  ;;  %v595_v44 = vpop.f32.mrb[1].mxu1 }
 0x1cb   :  { %v240_v45 = vpop.f32.mrb[2].mxu1 }
 0x1cc   :  { %v241_v46 = vadd.f32 %v491_v41, %v240_v45  ;;  %v596_v47 = vpop.f32.mrb[3].mxu1  ;;  %v244_v48 = vmax.f32 %v238_v43, 0.0 }
 0x1ce   :  { %v245_v49 = vmax.f32 %v241_v46, 0.0 }
 0x1d0   :  { %v246_v50 = vpack.c.bf16 %v245_v49, %v244_v48 }
 0x1d2   :  { %614 = vmatmul.mubr.bf16.vlgmr.msra.gmra.mrb[4].mxu0 %v246_v50 }
 0x2a5   :  { %v349_v54 = vpop.f32.mrb[4].mxu0 }
 0x2a6   :  { %v350_v55 = vadd.f32 %v500_v53, %v349_v54  ;;  %v615_v56 = vpop.f32.mrb[5].mxu0 }
 0x2a7   :  { %v352_v57 = vpop.f32.mrb[6].mxu0 }
 0x2a8   :  { %v353_v58 = vadd.f32 %v500_v53, %v352_v57  ;;  %v616_v59 = vpop.f32.mrb[7].mxu0  ;;  %v356_v60 = vmax.f32 %v350_v55, 0.0 }
 0x2aa   :  { %v357_v61 = vmax.f32 %v353_v58, 0.0 }
 0x2ac   :  { %v358_v62 = vpack.c.bf16 %v357_v61, %v356_v60 }
 0x2ae   :  { %634 = vmatmul.mubr.bf16.vlgmr.msra.gmra.mrb[4].mxu1 %v358_v62 }
 0x381   :  { %v461_v0 = vpop.f32.mrb[4].mxu1 }
 0x382   :  { %v635_v1 = vpop.f32.mrb[5].mxu1  ;;  %v462_v3 = vadd.f32 %v509_v63, %v461_v0 }
 0x383   :  { %v464_v2 = vpop.f32.mrb[6].mxu1 }
 0x384   :  { %v465_v4 = vadd.f32 %v509_v63, %v464_v2  ;;  %v636_v5 = vpop.f32.mrb[7].mxu1 }
 0x386   :  { %v525_v6 = vpack.c.bf16 %v465_v4, %v462_v3 }
 0x388   :  { %526 = vst [vmem:[%s859_s6] sm:$0xff] %v525_v6  }

</bundles_post_ra>
